<compile_context>
chip_gen: v6e
topology: v6e:2x2x1
jax: 0.10.0
libtpu: 0.0.40
codegen_flags: <defaults>
</compile_context>

<pallas_src>
import functools

import jax
import jax.numpy as jnp
from jax.experimental import pallas as pl
from jax.experimental.pallas import tpu as pltpu


_LANE = 128
# Per-block VMEM budget for the tiled path (in + out, double buffered).
_TILE_VMEM_BUDGET = 8 * 1024 * 1024
# Threshold under which the fully-resident single-pass path is used.
_RESIDENT_VMEM_BUDGET = 16 * 1024 * 1024


def _round_up(x, m):
    return (x + m - 1) // m * m


def _fold_params(w, b, gamma, beta, run_mean, run_var, eps):
    """Fold conv bias + inference BN into a single weight / shift (f32)."""
    # BN(conv(p)) = scale*(W p + b) + (beta - mean*scale)
    #             = (scale[:,None]*W) p + (scale*b + beta - mean*scale)
    scale = gamma.astype(jnp.float32) / jnp.sqrt(run_var.astype(jnp.float32) + eps)
    w_folded = scale[:, None] * w.astype(jnp.float32)                    # (C, C)
    shift = (scale * b.astype(jnp.float32) + beta.astype(jnp.float32)
             - run_mean.astype(jnp.float32) * scale)                     # (C,)
    return w_folded, shift.reshape(-1, 1)


# --------------------------------------------------------------------------
# Path 1: resident single-pass kernel (one grid step per batch element).
# --------------------------------------------------------------------------
def _arm_resident_kernel(x_ref, w_ref, shift_ref, o_ref, *, inv_hw):
    # x_ref/o_ref: (C, HW_pad) native dtype; w_ref: (C, C) f32; shift: (C, 1) f32
    xf = x_ref[...].astype(jnp.float32)
    # Global average pool; spatial padding is zeros so the sum is exact,
    # divide by the true (unpadded) H*W.
    pooled = jnp.sum(xf, axis=-1, keepdims=True) * inv_hw                # (C, 1)
    y = jnp.dot(w_ref[...], pooled, preferred_element_type=jnp.float32)  # (C, 1)
    att = jax.nn.sigmoid(y + shift_ref[...])
    o_ref[...] = (xf * att).astype(o_ref.dtype)


# --------------------------------------------------------------------------
# Path 2, phase 1: pool over HW tiles (reduction axis last) + compute att.
# --------------------------------------------------------------------------
def _arm_pool_kernel(x_ref, w_ref, shift_ref, att_ref, acc_ref, *, inv_hw):
    k = pl.program_id(1)

    @pl.when(k == 0)
    def _():
        acc_ref[...] = jnp.zeros_like(acc_ref)

    acc_ref[...] += jnp.sum(x_ref[...].astype(jnp.float32),
                            axis=-1, keepdims=True)

    @pl.when(k == pl.num_programs(1) - 1)
    def _():
        pooled = acc_ref[...] * inv_hw
        y = jnp.dot(w_ref[...], pooled, preferred_element_type=jnp.float32)
        att_ref[...] = jax.nn.sigmoid(y + shift_ref[...])


# --------------------------------------------------------------------------
# Path 2, phase 2: elementwise channel gating (fully parallel grid).
# --------------------------------------------------------------------------
def _arm_gate_kernel(x_ref, att_ref, o_ref):
    # x_ref/o_ref: (C, TILE); att_ref: (C, 1) f32, broadcast over lanes.
    o_ref[...] = (x_ref[...].astype(jnp.float32) * att_ref[...]).astype(o_ref.dtype)


def attention_refinement(x_nchw, w, b, gamma, beta, run_mean, run_var,
                         eps=1e-5, force_tiled=False):
    N, C, H, W = x_nchw.shape
    Cout, Cin = w.shape
    assert Cin == C and Cout == C, "in_channels must equal out_channels"
    HW = H * W
    dtype = x_nchw.dtype
    itemsize = jnp.dtype(dtype).itemsize

    w_folded, shift = _fold_params(w, b, gamma, beta, run_mean, run_var, eps)
    inv_hw = 1.0 / float(HW)

    x = x_nchw.reshape(N, C, HW)

    # ------------------------ resident single-pass ------------------------
    hw_pad_res = _round_up(HW, _LANE)
    resident_bytes = 4 * C * hw_pad_res * itemsize + 2 * C * (C + 1) * 4

    if not force_tiled and resident_bytes <= _RESIDENT_VMEM_BUDGET:
        hw_pad = hw_pad_res
        x_p = x if hw_pad == HW else jnp.pad(x, ((0, 0), (0, 0), (0, hw_pad - HW)))
        kernel = functools.partial(_arm_resident_kernel, inv_hw=inv_hw)
        out = pl.pallas_call(
            kernel,
            out_shape=jax.ShapeDtypeStruct((N, C, hw_pad), dtype),
            grid_spec=pltpu.PrefetchScalarGridSpec(
                num_scalar_prefetch=0,
                grid=(N,),
                in_specs=[
                    pl.BlockSpec((pl.Squeezed(), C, hw_pad), lambda n: (n, 0, 0)),
                    pl.BlockSpec((C, C), lambda n: (0, 0)),
                    pl.BlockSpec((C, 1), lambda n: (0, 0)),
                ],
                out_specs=pl.BlockSpec((pl.Squeezed(), C, hw_pad),
                                       lambda n: (n, 0, 0)),
            ),
            compiler_params=pltpu.CompilerParams(
                dimension_semantics=("parallel",),
                vmem_limit_bytes=48 << 20),
            cost_estimate=pl.CostEstimate(
                flops=2 * N * (C * hw_pad + C * C),
                transcendentals=N * C,
                bytes_accessed=2 * N * C * hw_pad * itemsize + C * C * 4),
        )(x_p, w_folded, shift)
        if hw_pad != HW:
            out = out[:, :, :HW]
        return out.reshape(N, C, H, W)

    # --------------------------- two-phase tiled ---------------------------
    max_tile = max(_LANE, (_TILE_VMEM_BUDGET // (4 * C * itemsize)) // _LANE * _LANE)
    tile = max(_LANE, min(_round_up(HW, _LANE), max_tile, 2048))
    hw_pad = _round_up(HW, tile)
    kt = hw_pad // tile

    x_p = x if hw_pad == HW else jnp.pad(x, ((0, 0), (0, 0), (0, hw_pad - HW)))

    # Phase 1: pooled attention weights, one (C,1) per batch element.
    pool_kernel = functools.partial(_arm_pool_kernel, inv_hw=inv_hw)
    att = pl.pallas_call(
        pool_kernel,
        out_shape=jax.ShapeDtypeStruct((N, C, 1), jnp.float32),
        grid_spec=pltpu.PrefetchScalarGridSpec(
            num_scalar_prefetch=0,
            grid=(N, kt),
            in_specs=[
                pl.BlockSpec((pl.Squeezed(), C, tile), lambda n, k: (n, 0, k)),
                pl.BlockSpec((C, C), lambda n, k: (0, 0)),
                pl.BlockSpec((C, 1), lambda n, k: (0, 0)),
            ],
            out_specs=pl.BlockSpec((pl.Squeezed(), C, 1), lambda n, k: (n, 0, 0)),
            scratch_shapes=[pltpu.VMEM((C, 1), jnp.float32)],
        ),
        compiler_params=pltpu.CompilerParams(
            dimension_semantics=("parallel", "arbitrary"),
            vmem_limit_bytes=32 << 20),
        cost_estimate=pl.CostEstimate(
            flops=N * (C * hw_pad + 2 * C * C),
            transcendentals=N * C,
            bytes_accessed=N * C * hw_pad * itemsize + N * C * 4 + C * C * 4),
    )(x_p, w_folded, shift)

    # Phase 2: elementwise gating, lane-dense 128-multiple tiles, fully
    # parallel grid (shards across TensorCores on v7x).
    out = pl.pallas_call(
        _arm_gate_kernel,
        out_shape=jax.ShapeDtypeStruct((N, C, hw_pad), dtype),
        grid_spec=pltpu.PrefetchScalarGridSpec(
            num_scalar_prefetch=0,
            grid=(N, kt),
            in_specs=[
                pl.BlockSpec((pl.Squeezed(), C, tile), lambda n, k: (n, 0, k)),
                pl.BlockSpec((pl.Squeezed(), C, 1), lambda n, k: (n, 0, 0)),
            ],
            out_specs=pl.BlockSpec((pl.Squeezed(), C, tile), lambda n, k: (n, 0, k)),
        ),
        compiler_params=pltpu.CompilerParams(
            dimension_semantics=("parallel", "parallel"),
            vmem_limit_bytes=32 << 20),
        cost_estimate=pl.CostEstimate(
            flops=N * C * hw_pad,
            transcendentals=0,
            bytes_accessed=2 * N * C * hw_pad * itemsize + N * C * 4),
    )(x_p, att)

    if hw_pad != HW:
        out = out[:, :, :HW]
    return out.reshape(N, C, H, W)


def _reference(x, w, b, gamma, beta, run_mean, run_var, eps=1e-5):
    xf = x.astype(jnp.float32)
    pooled = jnp.mean(xf, axis=(2, 3))                                  # (N, C)
    y = jnp.einsum('oi,ni->no', w.astype(jnp.float32), pooled) + b      # (N, C)
    y = (y - run_mean) / jnp.sqrt(run_var + eps) * gamma + beta
    att = jax.nn.sigmoid(y)[:, :, None, None]
    return xf * att


if __name__ == "__main__":
    key = jax.random.PRNGKey(0)
    k_x, k_w, k_b, k_g, k_be, k_m, k_v = jax.random.split(key, 7)

    N, C, H, W = 2, 8, 16, 16   # in_channels == out_channels == 8

    x = jax.random.normal(k_x, (N, C, H, W), dtype=jnp.float32)
    # Deterministic synthetic parameters (not a checkpoint).
    w = jax.random.normal(k_w, (C, C), dtype=jnp.float32) * 0.1       # Conv2d 1x1
    b = jax.random.normal(k_b, (C,), dtype=jnp.float32) * 0.1
    gamma = 1.0 + 0.1 * jax.random.normal(k_g, (C,), dtype=jnp.float32)
    beta = 0.1 * jax.random.normal(k_be, (C,), dtype=jnp.float32)
    run_mean = 0.1 * jax.random.normal(k_m, (C,), dtype=jnp.float32)
    run_var = 1.0 + 0.1 * jax.random.uniform(k_v, (C,), dtype=jnp.float32)

    ref = _reference(x, w, b, gamma, beta, run_mean, run_var)

    # 1) Resident single-pass path, f32.
    out = jax.block_until_ready(
        attention_refinement(x, w, b, gamma, beta, run_mean, run_var))
    assert out.shape == (N, C, H, W) and out.dtype == x.dtype
    assert jnp.allclose(out, ref, atol=1e-5, rtol=1e-5), "resident path mismatch"

    # 2) Two-phase tiled path (auto-selected for large C*HW), f32.
    out_t = jax.block_until_ready(
        attention_refinement(x, w, b, gamma, beta, run_mean, run_var,
                             force_tiled=True))
    assert jnp.allclose(out_t, ref, atol=1e-5, rtol=1e-5), "tiled path mismatch"

    # 3) Native bf16 I/O with a non-128-aligned spatial size (exercises padding).
    Hb, Wb = 15, 20
    xb = jax.random.normal(k_x, (N, C, Hb, Wb),
                           dtype=jnp.float32).astype(jnp.bfloat16)
    ref_b = _reference(xb, w, b, gamma, beta, run_mean, run_var)
    out_b = jax.block_until_ready(
        attention_refinement(xb, w, b, gamma, beta, run_mean, run_var))
    assert out_b.shape == (N, C, Hb, Wb) and out_b.dtype == jnp.bfloat16
    assert jnp.allclose(out_b.astype(jnp.float32), ref_b,
                        atol=5e-2, rtol=5e-2), "bf16 path mismatch"

    print("KERNEL_OK")
</pallas_src>

<mosaic_0001>
module attributes {stable_mosaic.version = 11 : i64} {
  func.func @_arm_resident_kernel(%arg0: i32, %arg1: memref<1x8x256xf32, #tpu.memory_space<vmem>>, %arg2: memref<8x8xf32, #tpu.memory_space<vmem>>, %arg3: memref<8x1xf32, #tpu.memory_space<vmem>>, %arg4: memref<1x8x256xf32, #tpu.memory_space<vmem>>) attributes {dimension_semantics = [#tpu.dimension_semantics<parallel>], iteration_bounds = array<i64: 2>, scalar_prefetch = 0 : i64, scratch_operands = 0 : i64, tpu.core_type = #tpu.core_type<tc>, window_params = [{transform_indices = @transform_0, window_bounds = array<i64: 1, 8, 256>}, {pipeline_mode = #tpu.pipeline_mode<synchronous>, transform_indices = @transform_1, window_bounds = array<i64: 8, 8>}, {pipeline_mode = #tpu.pipeline_mode<synchronous>, transform_indices = @transform_2, window_bounds = array<i64: 8, 1>}, {transform_indices = @transform_3, window_bounds = array<i64: 1, 8, 256>}]} {
    %c0 = arith.constant 0 : index
    %c0_0 = arith.constant 0 : index
    %c0_1 = arith.constant 0 : index
    %0 = vector.load %arg1[%c0, %c0_0, %c0_1] : memref<1x8x256xf32, #tpu.memory_space<vmem>>, vector<1x8x256xf32>
    %1 = vector.shape_cast %0 : vector<1x8x256xf32> to vector<8x256xf32>
    %cst = arith.constant dense<0.000000e+00> : vector<8xf32>
    %2 = vector.multi_reduction <add>, %1, %cst [1] : vector<8x256xf32> to vector<8xf32>
    %3 = vector.shape_cast %2 : vector<8xf32> to vector<8x1xf32>
    %cst_2 = arith.constant 3.906250e-03 : f32
    %4 = vector.broadcast %cst_2 : f32 to vector<8x1xf32>
    %5 = arith.mulf %3, %4 : vector<8x1xf32>
    %c0_3 = arith.constant 0 : index
    %c0_4 = arith.constant 0 : index
    %6 = vector.load %arg2[%c0_3, %c0_4] : memref<8x8xf32, #tpu.memory_space<vmem>>, vector<8x8xf32>
    %cst_5 = arith.constant dense<0.000000e+00> : vector<8x1xf32>
    %7 = tpu.matmul %6, %5, %cst_5 {dimension_numbers = #tpu.dot_dimension_numbers<[1], [0], [0], [1], [0, 0, 1, 1], [], []>} : vector<8x8xf32>, vector<8x1xf32>, vector<8x1xf32> -> vector<8x1xf32>
    %c0_6 = arith.constant 0 : index
    %c0_7 = arith.constant 0 : index
    %8 = vector.load %arg3[%c0_6, %c0_7] : memref<8x1xf32, #tpu.memory_space<vmem>>, vector<8x1xf32>
    %9 = arith.addf %7, %8 : vector<8x1xf32>
    %10 = arith.negf %9 : vector<8x1xf32>
    %11 = math.exp %10 : vector<8x1xf32>
    %cst_8 = arith.constant 1.000000e+00 : f32
    %12 = vector.broadcast %cst_8 : f32 to vector<8x1xf32>
    %13 = arith.addf %12, %11 : vector<8x1xf32>
    %14 = arith.divf %12, %13 : vector<8x1xf32>
    %15 = vector.broadcast %14 : vector<8x1xf32> to vector<8x256xf32>
    %16 = arith.mulf %1, %15 : vector<8x256xf32>
    %c0_9 = arith.constant 0 : index
    %c0_10 = arith.constant 0 : index
    %c0_11 = arith.constant 0 : index
    %17 = vector.load %arg4[%c0_9, %c0_10, %c0_11] : memref<1x8x256xf32, #tpu.memory_space<vmem>>, vector<1x8x256xf32>
    %18 = vector.shape_cast %17 : vector<1x8x256xf32> to vector<8x256xf32>
    %19 = vector.shape_cast %16 : vector<8x256xf32> to vector<1x8x256xf32>
    tpu.vector_store %arg4[%c0_9, %c0_10, %c0_11], %19 {strides = array<i32>} : memref<1x8x256xf32, #tpu.memory_space<vmem>>, vector<1x8x256xf32>,
    return
  }
  func.func @transform_0(%arg0: i32) -> (i32, i32, i32) {
    %c0_i32 = arith.constant 0 : i32
    %c0_i32_0 = arith.constant 0 : i32
    %c0_i32_1 = arith.constant 0 : i32
    return %arg0, %c0_i32, %c0_i32_0 : i32, i32, i32
  }
  func.func @transform_1(%arg0: i32) -> (i32, i32) {
    %c0_i32 = arith.constant 0 : i32
    %c0_i32_0 = arith.constant 0 : i32
    %c0_i32_1 = arith.constant 0 : i32
    return %c0_i32, %c0_i32_0 : i32, i32
  }
  func.func @transform_2(%arg0: i32) -> (i32, i32) {
    %c0_i32 = arith.constant 0 : i32
    %c0_i32_0 = arith.constant 0 : i32
    %c0_i32_1 = arith.constant 0 : i32
    return %c0_i32, %c0_i32_0 : i32, i32
  }
  func.func @transform_3(%arg0: i32) -> (i32, i32, i32) {
    %c0_i32 = arith.constant 0 : i32
    %c0_i32_0 = arith.constant 0 : i32
    %c0_i32_1 = arith.constant 0 : i32
    return %arg0, %c0_i32, %c0_i32_0 : i32, i32, i32
  }
}

</mosaic_0001>

<bundles_post_ra>
// kernel: tpu_custom_call.1
= control target key start
LH: loop header
LB: loop body
LE: loop exit
PB: predicated region body
PF: predicated region fallthrough
CT: control target
= control target key end

     0   :  { %8 = vsyncpa [#allocation3], 0  ;;  %s724_s0 = inlined_call_operand.hbm [shape: f32[2,8,256], index: 0, kind: input, shape index: {}]   ;;  %s725_s1 = inlined_call_operand.vmem [shape: f32[8,8], index: 1, kind: input, shape index: {}]   ;;  %s726_s2 = inlined_call_operand.vmem [shape: f32[8,1], index: 2, kind: input, shape index: {}]   ;;  %s727_s3 = inlined_call_operand.hbm [shape: f32[2,8,256], index: 3, kind: output, shape index: {}]  }
   0x1   :  { %10 = vsyncpa [#allocation3 + $0x1], 0 }
   0x2   :  { %11 = vsyncpa [#allocation4], 0 }
   0x3   :  { %13 = vsyncpa [#allocation4 + $0x1], 0  ;;  %s567_s12 = smov 0   ;;  %s569_s13 = smov 0  }
   0x4   :  { %s571_s14 = smov 0   ;;  %s573_s15 = smov 0  }
   0x5 LB: > { %s588_s16 = sadd.s32 4294967295, %s540_s15   ;;  %s369_s17 = sadd.s32 4294967294, %s540_s15   ;;  %s540_s15 = sphi %s573_s15, %s744_s15   ;;  %s536_s14 = sphi %s571_s14, %s743_s14   ;;  %s532_s13 = sphi %s569_s13, %s742_s13   ;;  %s528_s12 = sphi %s567_s12, %s741_s12  }
   0x6   : > { %s592_s18 = sadd.s32 1, %s540_s15   ;;  %s26_s19 = sadd.s32 1, %s536_s14 }
   0x7   : > { %s23_s20 = ssub.s32 %s540_s15, %s592_s18  ;;  %p33_p0 = scmp.ne.s32.totalorder %s536_s14, %s532_s13 }
   0x8   : > { %p24_p1 = scmp.eq.s32.totalorder %s23_s20, 0  ;;  %p34_p2 = scmp.eq.s32.totalorder %s540_s15, 0 }
   0x9   : > { %p39_p3 = scmp.ne.s32.totalorder %s532_s13, %s528_s12  ;;  %p40_p4 = scmp.eq.s32.totalorder %s588_s16, 0 }
   0xa   : > { %s604_s21 = scalar_select %p24_p1, %s536_s14, %s26_s19  }
   0xb   : > { %p606_p5 = por %p34_p2, %p33_p0  ;;  %p610_p6 = por %p40_p4, %p39_p3 }
   0xc   : > { %p105_p7 = scmp.eq.s32.totalorder %s588_s16, 1  ;;  %p111_p8 = scmp.eq.s32.totalorder %s369_s17, 1 }
   0xd   : > { %s731_s23 = scalar_select %p610_p6, 1, 0 }
   0xe   : > { %p406_p10 = scmp.lt.s32.totalorder %s540_s15, 2  ;;  %p617_p11 = por %p105_p7, %p33_p0 }
   0xf   : > { %p621_p12 = por %p111_p8, %p39_p3  ;;  %s137_s26 = sand.u32 1, %s536_s14  }
  0x10   : > { %s732_s24 = scalar_select %p617_p11, 1, 0 }
  0x11   : > { %s733_s25 = scalar_select %p621_p12, 1, 0 }
  0x12   : > { %s385_s27 = sshll.u32 %s540_s15, 8  ;;  %s372_s28 = sshll.u32 %s137_s26, 4 }
  0x13   : > { %s630_s4 = scalar_lea.hbm %s724_s0, %s385_s27  ;;  %s141_s5 = scalar_lea.vmem [#allocation2], %s372_s28 }
  0x14   : > { %s149_s6 = sshll.u32 %s141_s5, 4  ;;  %p634_p13 = pnand %p406_p10, %p606_p5  ;;  %s638_s6 = int_to_ptr.vmem [resolvable:$true] %s149_s6 }
  0x15   : > { %s138_s8 = scalar_lea.sflag [#allocation3], %s137_s26  ;;  %s448_s9 = scalar_lea.hbm %s630_s4, 256 }
  0x16   : > { %p449_p2 = scmp.ne.s32.totalorder %s630_s4, %s448_s9  ;;  %p450_p3 = pneg %p634_p13 }
  0x17   : > { %s453_s17 = scalar_lea.hbm %s724_s0, 512  ;;  %p454_p5 = scmp.lt.s32.totalorder %s630_s4, %s724_s0 }
  0x18   : > { %p451_p4 = pnand %p450_p3, %p449_p2  ;;  %p455_p8 = scmp.lt.s32.totalorder %s453_s17, %s448_s9 }
  0x1a   : > { %p452_p7 = pneg %p451_p4  ;;  %p456_p10 = por %p455_p8, %p454_p5 }
  0x1c   : > { %p457_p9 = pnand %p456_p10, %p452_p7 }
  0x1e   : > { %460 = shalt.err (!%p457_p9)
}
  0x1f   : > { %s461_s22 = scalar_lea.vmem %s638_s6, 256  ;;  %s542_s26 = smov [#allocation2]  }
  0x20   : > { %p462_p0 = scmp.ne.s32.totalorder %s638_s6, %s461_s22  ;;  %s466_s27 = sshll.u32 %s542_s26, 4  ;;  %s467_s27 = int_to_ptr.vmem [resolvable:$false] %s466_s27 }
  0x21   : > { %s468_s28 = scalar_lea.vmem %s467_s27, 512  ;;  %p469_p4 = scmp.lt.s32.totalorder %s638_s6, %s467_s27 }
  0x22   : > { %p464_p1 = pnand %p462_p0, %p450_p3  ;;  %p470_p12 = scmp.lt.s32.totalorder %s468_s28, %s461_s22 }
  0x24   : > { %p465_p2 = pneg %p464_p1  ;;  %p471_p11 = por %p470_p12, %p469_p4 }
  0x26   : > { %p472_p6 = pnand %p471_p11, %p465_p2 }
  0x28   : > { %475 = shalt.err (!%p472_p6)
}
  0x29   : > { %401 = dma.hbm_to_vmem [thread:$0]  (!%p634_p13), %s630_s4, 256, %s638_s6, %s138_s8  }
  0x2a   : > { %p735_p9 = scmp.lt.s32.totalorder %s540_s15, 3  ;;  %p736_p7 = scmp.ge.s32.totalorder %s540_s15, 1 }
  0x2c   : > { %p155_p0 = pnand %p736_p7, %p735_p9 }
  0x2d   : > { %s665_s29 = sand.u32 (!%p155_p0), 1, %s532_s13   ;;  %p737_p6 = scmp.ne.s32.totalorder (!%p155_p0), %s731_s23, 0 }
  0x2e   : > { %158 = sbr.rel (%p155_p0) target bundleno = 562 (0x232), region = 32  ;;  %s376_s30 = sshll.u32 (!%p155_p0), %s665_s29, 4 }
  0x2f   : > { %s161_s5 = scalar_lea.sflag (!%p155_p0), [#allocation3], %s665_s29  ;;  %s164_s7 = scalar_lea.vmem (!%p155_p0), [#allocation2], %s376_s30 }
  0x33   : > { %519 = dma.done.wait (%p737_p6), %s161_s5, 256  }
  0x34   : > { %521 = vsyncadd (%p737_p6), %s161_s5, 4294967040  ;;  %v187_v0 = vld [vmem:[%s164_s7] sm:$0xff]  ;;  %v188_v1 = vld [vmem:[%s164_s7 + $0x8] sm:$0xff]  ;;  %v543_v3 = vmov 0.0   ;;  %vm544_vm0 = vmmov 0   ;;  %vm195_vm1 = vcmask 64512  }
  0x35   : > { %v189_v2 = vadd.f32 %v188_v1, %v187_v0  ;;  %389 = vmatprep.subr.mxu0 %v543_v3  ;;  %391 = vmatprep.mubr.msk.f32.mxu0 %vm544_vm0, %v543_v3  ;;  %v193_v6 = vld [vmem:[%s725_s1] sm:$0xff]  ;;  %v545_v7 = vmov 0   ;;  %s386_s9 = sshll.u32 %s588_s16, 8  ;;  %s186_s10 = scalar_lea.vmem [#allocation5], %s376_s30 }
  0x36   : > { %443 = vset.pattern.permute.xlu0 %v545_v7  ;;  %v194_v8 = vld [vmem:[%s726_s2] sm:$0xff]  ;;  %s299_s11 = sshll.u32 %s186_s10, 4  ;;  %s687_s20 = scalar_lea.hbm %s727_s3, %s386_s9  ;;  %s300_s11 = int_to_ptr.vmem [resolvable:$true] %s299_s11 }
  0x37   : > { %190 = vadd.xlane.f32.xlu0 %v189_v2  ;;  %s285_s22 = scalar_lea.sflag [#allocation4], %s665_s29  ;;  %s476_s26 = scalar_lea.vmem %s300_s11, 256 }
  0x38   : > { %p477_p11 = scmp.ne.s32.totalorder %s300_s11, %s476_s26  ;;  %p738_p12 = scmp.ne.s32.totalorder %s732_s24, 0 }
  0x39   : > { %s546_s16 = smov [#allocation5]  }
  0x3a   : > { %p478_p13 = pnand %p477_p11, %p738_p12  ;;  %s480_s27 = sshll.u32 %s546_s16, 4  ;;  %s481_s27 = int_to_ptr.vmem [resolvable:$false] %s480_s27 }
  0x3b   : > { %s482_s28 = scalar_lea.vmem %s481_s27, 512  ;;  %p483_p3 = scmp.lt.s32.totalorder %s300_s11, %s481_s27 }
  0x3c   : > { %p479_p1 = pneg %p478_p13  ;;  %p484_p5 = scmp.lt.s32.totalorder %s482_s28, %s476_s26 }
  0x3e   : > { %p485_p8 = por %p484_p5, %p483_p3 }
  0x40   : > { %p486_p10 = pnand %p485_p8, %p479_p1 }
  0xc0   : > { %v191_v4 = vpop.xlane.xlu0 %190 }
  0xc1   : > { %v192_v5 = vmul.f32 0.00390625, %v191_v4 }
  0xc3   : > { %390 = vmatpush3.msra.mxu0 %v192_v5 }
  0xc4   : > { %392 = vmatmul.mubr.msk.f32.vlgmr.msra.gmra.mxu0 %vm195_vm1, %v193_v6 }
 0x184   : > { %v265_v9 = vpop.f32.mrf.mxu0 }
 0x185   : > { %v266_v10 = vadd.f32 %v265_v9, %v194_v8 }
 0x186   : > { %v393_v11 = vpop.f32.mrf.mxu0 }
 0x187   : > { %v379_v12 = vmul.f32 -1.442695, %v266_v10 }
 0x189   : > { %444 = vpow2.f32 %v379_v12 }
 0x196   : > { %v445_v13 = vpop.eup %444 }
 0x197   : > { %v272_v14 = vadd.f32 1.0, %v445_v13 }
 0x199   : > { %446 = vrcp.f32 %v272_v14 }
 0x1a6   : > { %v447_v15 = vpop.eup %446 }
 0x1a7   : > { %277 = vperm.xlu0 %443, %v447_v15  }
 0x222   : > { %v278_v16 = vpop.permute.xlu0 %277 }
 0x223   : > { %v280_v17 = vmul.f32 %v278_v16, %v187_v0  ;;  %v281_v18 = vmul.f32 %v278_v16, %v188_v1 }
 0x225   : > { %282 = vst [vmem:[%s186_s10] sm:$0xff] %v280_v17  ;;  %283 = vst [vmem:[%s186_s10 + $0x8] sm:$0xff] %v281_v18 }
 0x226   : > { %489 = shalt.err (!%p486_p10)
}
 0x227   : > { %s490_s30 = scalar_lea.hbm %s687_s20, 256  ;;  %s494_s7 = scalar_lea.hbm %s727_s3, 512 }
 0x228   : > { %p491_p2 = scmp.ne.s32.totalorder %s687_s20, %s490_s30  ;;  %p495_p7 = scmp.lt.s32.totalorder %s687_s20, %s727_s3 }
 0x229   : > { %p496_p0 = scmp.lt.s32.totalorder %s494_s7, %s490_s30 }
 0x22a   : > { %p492_p4 = pnand %p491_p2, %p738_p12 }
 0x22b   : > { %p497_p6 = por %p496_p0, %p495_p7 }
 0x22c   : > { %p493_p9 = pneg %p492_p4 }
 0x22e   : > { %p498_p11 = pnand %p497_p6, %p493_p9 }
 0x230   : > { %501 = shalt.err (!%p498_p11)
}
 0x231   : > { %396 = dma.vmem_to_hbm [thread:$0]  (%p738_p12), %s300_s11, 256, %s687_s20, %s285_s22  }
 0x232 PF: > { %s311_s23 = sand.u32 1, %s528_s12   ;;  %p739_p13 = scmp.ne.s32.totalorder %s733_s25, 0 }
 0x233   : > { %p740_p1 = scmp.ge.s32.totalorder %s540_s15, 2  ;;  %s312_s8 = scalar_lea.sflag [#allocation4], %s311_s23 }
 0x235   : > { %p403_p3 = pnand %p740_p1, %p739_p13 }
 0x237   : > { %p404_p5 = pneg %p403_p3 }
 0x239   : > { %523 = dma.done.wait (%p404_p5), %s312_s8, 256  }
 0x23a   : > { %525 = vsyncadd (%p404_p5), %s312_s8, 4294967040  ;;  %p16_p8 = scmp.ge.s32.totalorder %s592_s18, 4   ;;  %s741_s12 = smov %s532_s13 }
 0x23b   : > { %s742_s13 = smov %s536_s14  ;;  %s743_s14 = smov %s604_s21 }
 0x23c   : > { %s744_s15 = smov %s592_s18  ;;  %18 = sbr.rel (!%p16_p8) target bundleno = 5 (0x5), region = 77 }
 0x241   :  { %317 = vsyncpa [#allocation3], 1 }
 0x242   :  { %319 = vsyncpa [#allocation3 + $0x1], 1 }
 0x243   :  { %320 = vsyncpa [#allocation4], 1 }
 0x244   :  { %322 = vsyncpa [#allocation4 + $0x1], 1 }

</bundles_post_ra>
